<compile_context>
chip_gen: v7x
topology: tpu7x:2x2x1
jax: 0.10.0
libtpu: 0.0.40
codegen_flags: <defaults>
</compile_context>

<pallas_src>
import jax
import jax.numpy as jnp
from jax.experimental import pallas as pl
from jax.experimental.pallas import tpu as pltpu


def _pick_hw_tile(hw: int, b: int, c: int,
                  vmem_budget_bytes: int = 4 << 20) -> int:
    """Largest lane-dense (multiple-of-128) spatial tile that divides hw.

    The tile is capped so the double-buffered video input
    (2 * B * C * tile * 4 bytes) stays within `vmem_budget_bytes`, which keeps
    us comfortably inside the default scoped-VMEM limit on every generation
    (including v7x's 64 MiB physical VMEM).  When possible we keep >= 2 grid
    steps so the BlockSpec pipeline overlaps DMA with compute.
    """
    if hw % 128 != 0:
        return hw                          # tiny / irregular spatial extent: one block
    bytes_per_elem_col = 2 * b * c * 4     # double-buffered, f32
    budget_tile = max(128, vmem_budget_bytes // bytes_per_elem_col)
    t = min(budget_tile, hw)
    if t == hw and hw >= 256:
        t = hw // 2                        # keep >= 2 grid steps for overlap
    t -= t % 128
    t = max(t, 128)
    while hw % t != 0:
        t -= 128
    return t


def _build_kernel(inv_hw: float):
    def kernel(xv_ref, w_ref, b_ref, tok_ref, emb_ref,
               vid_ref, txt_ref, acc_ref):
        hi = pl.program_id(0)

        @pl.when(hi == 0)
        def _init_and_text():
            acc_ref[...] = jnp.zeros_like(acc_ref)
            # ---- Text encoder: mean pool folded into the lookup.
            # counts[b, v] = #occurrences of token v in row b, then a single
            # (B,V) @ (V,E) matmul and a 1/L scale — exactly mean(emb[tokens]).
            tokens = tok_ref[...]                                   # (B, L) i32
            Bt, L = tokens.shape
            V = emb_ref.shape[0]
            iota_v = jax.lax.broadcasted_iota(jnp.int32, (Bt, L, V), 2)
            counts = jnp.sum((tokens[:, :, None] == iota_v).astype(jnp.float32),
                             axis=1)                                # (B, V)
            pooled = jnp.dot(counts, emb_ref[...].astype(jnp.float32),
                             preferred_element_type=jnp.float32) * (1.0 / L)
            txt_ref[...] = pooled.astype(txt_ref.dtype)

        # ---- Video encoder: per-batch 1x1-conv channel mix on the MXU,
        # bias + ReLU, then spatial-sum accumulate.  The spatial tile T is the
        # lane axis (multiple of 128), so all vector work is lane-dense.  The
        # lane-axis reduction leaves (F, 1) with F on sublanes — the natural
        # layout of the (F, B) accumulator column, so no relayout is needed.
        w = w_ref[...].astype(jnp.float32)                          # (F, C)
        bias = b_ref[...].astype(jnp.float32)                       # (F, 1)
        B = xv_ref.shape[0]
        for b in range(B):                                          # static unroll
            x_b = xv_ref[b].astype(jnp.float32)                     # (C, T)
            y_b = jnp.dot(w, x_b, preferred_element_type=jnp.float32)   # (F, T)
            y_b = jnp.maximum(y_b + bias, 0.0)
            acc_ref[:, b:b + 1] += jnp.sum(y_b, axis=1, keepdims=True)  # (F, 1)

        @pl.when(hi == pl.num_programs(0) - 1)
        def _finalize():
            # Stored as (F, B); transposed (tiny) in the wrapper.
            vid_ref[...] = (acc_ref[...] * inv_hw).astype(vid_ref.dtype)

    return kernel


@jax.jit
def _forward(video, tokens, w, b, emb):
    B, C, H, W = video.shape
    F = w.shape[0]
    L = tokens.shape[1]
    V, E = emb.shape
    HW = H * W

    xv = video.reshape(B, C, HW)          # free reshape — NO NCHW->NHWC transpose
    tile = _pick_hw_tile(HW, B, C)
    n_hw = HW // tile
    inv_hw = 1.0 / float(HW)

    vid_fb, txt = pl.pallas_call(
        _build_kernel(inv_hw),
        grid=(n_hw,),
        in_specs=[
            pl.BlockSpec((B, C, tile), lambda h: (0, 0, h)),   # video tile
            pl.BlockSpec((F, C), lambda h: (0, 0)),            # conv weight
            pl.BlockSpec((F, 1), lambda h: (0, 0)),            # conv bias
            pl.BlockSpec((B, L), lambda h: (0, 0)),            # token ids
            pl.BlockSpec((V, E), lambda h: (0, 0)),            # embedding table
        ],
        out_specs=(
            pl.BlockSpec((F, B), lambda h: (0, 0)),            # video features
            pl.BlockSpec((B, E), lambda h: (0, 0)),            # text features
        ),
        out_shape=(
            jax.ShapeDtypeStruct((F, B), jnp.float32),
            jax.ShapeDtypeStruct((B, E), jnp.float32),
        ),
        scratch_shapes=[pltpu.VMEM((F, B), jnp.float32)],      # spatial-sum acc
        compiler_params=pltpu.CompilerParams(
            dimension_semantics=("arbitrary",),                # spatial reduction
        ),
    )(xv, w, b.reshape(F, 1), tokens, emb)

    return vid_fb.T, txt                                        # (B, F), (B, E)


class Model:
    """Pallas port of the PyTorch Model: [VideoEncoder(x[0]), TextEncoder(x[1])]."""

    def __init__(self, vocab_size, embed_size, in_channels=4, feat_size=32,
                 key=jax.random.PRNGKey(0)):
        k1, k2 = jax.random.split(key, 2)
        # 1x1 conv weight stored in PyTorch (out_ch, in_ch) order -> (F, C).
        self.video_w = jax.random.normal(
            k1, (feat_size, in_channels), jnp.float32) * 0.1
        self.video_b = jnp.zeros((feat_size,), jnp.float32)
        self.embed = jax.random.normal(
            k2, (vocab_size, embed_size), jnp.float32) * 0.1

    def __call__(self, x):
        video_in, text_in = x[0], x[1]
        vid, txt = _forward(video_in, text_in,
                            self.video_w, self.video_b, self.embed)
        return [vid, txt]


if __name__ == "__main__":
    key = jax.random.PRNGKey(0)
    k_v, k_t, k_p = jax.random.split(key, 3)

    B, C, H, W = 2, 4, 16, 16            # video: NCHW
    L, V, E, F = 8, 32, 32, 32           # text: seq len, vocab, embed; feat size

    video = jax.random.normal(k_v, (B, C, H, W), jnp.float32)
    tokens = jax.random.randint(k_t, (B, L), 0, V, jnp.int32)

    model = Model(vocab_size=V, embed_size=E, in_channels=C, feat_size=F, key=k_p)

    out = model([video, tokens])
    out = [jax.block_until_ready(o) for o in out]

    # Pure-JAX reference for correctness.
    x_ref = video.reshape(B, C, H * W)
    y_ref = jnp.einsum("fc,bcn->bfn", model.video_w, x_ref) \
        + model.video_b[None, :, None]
    vid_ref = jnp.mean(jnp.maximum(y_ref, 0.0), axis=-1)
    txt_ref = jnp.mean(model.embed[tokens], axis=1)

    assert out[0].shape == (B, F) and out[1].shape == (B, E)
    assert jnp.allclose(out[0], vid_ref, rtol=1e-3, atol=1e-4)
    assert jnp.allclose(out[1], txt_ref, rtol=1e-3, atol=1e-4)
    print("KERNEL_OK")
</pallas_src>

<mosaic_0001>
module attributes {stable_mosaic.version = 11 : i64} {
  func.func @kernel(%arg0: i32, %arg1: memref<2x4x128xf32, #tpu.memory_space<vmem>>, %arg2: memref<32x4xf32, #tpu.memory_space<vmem>>, %arg3: memref<32x1xf32, #tpu.memory_space<vmem>>, %arg4: memref<2x8xi32, #tpu.memory_space<vmem>>, %arg5: memref<32x32xf32, #tpu.memory_space<vmem>>, %arg6: memref<32x2xf32, #tpu.memory_space<vmem>>, %arg7: memref<2x32xf32, #tpu.memory_space<vmem>>, %arg8: memref<32x2xf32, #tpu.memory_space<vmem>>) attributes {dimension_semantics = [#tpu.dimension_semantics<arbitrary>], iteration_bounds = array<i64: 2>, scalar_prefetch = 0 : i64, scratch_operands = 1 : i64, tpu.core_type = #tpu.core_type<tc>, window_params = [{transform_indices = @transform_0, window_bounds = array<i64: 2, 4, 128>}, {pipeline_mode = #tpu.pipeline_mode<synchronous>, transform_indices = @transform_1, window_bounds = array<i64: 32, 4>}, {pipeline_mode = #tpu.pipeline_mode<synchronous>, transform_indices = @transform_2, window_bounds = array<i64: 32, 1>}, {pipeline_mode = #tpu.pipeline_mode<synchronous>, transform_indices = @transform_3, window_bounds = array<i64: 2, 8>}, {pipeline_mode = #tpu.pipeline_mode<synchronous>, transform_indices = @transform_4, window_bounds = array<i64: 32, 32>}, {pipeline_mode = #tpu.pipeline_mode<synchronous>, transform_indices = @transform_5, window_bounds = array<i64: 32, 2>}, {pipeline_mode = #tpu.pipeline_mode<synchronous>, transform_indices = @transform_6, window_bounds = array<i64: 2, 32>}]} {
    %c0_i32 = arith.constant 0 : i32
    %0 = arith.cmpi eq, %arg0, %c0_i32 : i32
    %1 = arith.extui %0 : i1 to i32
    %c0_i32_0 = arith.constant 0 : i32
    %2 = arith.cmpi ne, %1, %c0_i32_0 : i32
    scf.if %2 {
      %cst_23 = arith.constant 0.000000e+00 : f32
      %32 = vector.broadcast %cst_23 : f32 to vector<32x2xf32>
      %c0_24 = arith.constant 0 : index
      %c0_25 = arith.constant 0 : index
      %33 = vector.load %arg8[%c0_24, %c0_25] : memref<32x2xf32, #tpu.memory_space<vmem>>, vector<32x2xf32>
      tpu.vector_store %arg8[%c0_24, %c0_25], %32 {strides = array<i32>} : memref<32x2xf32, #tpu.memory_space<vmem>>, vector<32x2xf32>,
      %c0_26 = arith.constant 0 : index
      %c0_27 = arith.constant 0 : index
      %34 = vector.load %arg4[%c0_26, %c0_27] : memref<2x8xi32, #tpu.memory_space<vmem>>, vector<2x8xi32>
      %35 = tpu.iota {dimensions = array<i32: 2>} : vector<2x8x32xi32>
      %36 = vector.shape_cast %34 : vector<2x8xi32> to vector<2x8x1xi32>
      %37 = vector.broadcast %36 : vector<2x8x1xi32> to vector<2x8x32xi32>
      %38 = arith.cmpi eq, %37, %35 : vector<2x8x32xi32>
      %39 = arith.extui %38 : vector<2x8x32xi1> to vector<2x8x32xi32>
      %40 = arith.sitofp %39 : vector<2x8x32xi32> to vector<2x8x32xf32>
      %cst_28 = arith.constant dense<0.000000e+00> : vector<2x32xf32>
      %41 = vector.multi_reduction <add>, %40, %cst_28 [1] : vector<2x8x32xf32> to vector<2x32xf32>
      %c0_29 = arith.constant 0 : index
      %c0_30 = arith.constant 0 : index
      %42 = vector.load %arg5[%c0_29, %c0_30] : memref<32x32xf32, #tpu.memory_space<vmem>>, vector<32x32xf32>
      %cst_31 = arith.constant dense<0.000000e+00> : vector<2x32xf32>
      %43 = tpu.matmul %41, %42, %cst_31 {dimension_numbers = #tpu.dot_dimension_numbers<[1], [0], [0], [1], [0, 0, 1, 1], [], []>} : vector<2x32xf32>, vector<32x32xf32>, vector<2x32xf32> -> vector<2x32xf32>
      %cst_32 = arith.constant 1.250000e-01 : f32
      %44 = vector.broadcast %cst_32 : f32 to vector<2x32xf32>
      %45 = arith.mulf %43, %44 : vector<2x32xf32>
      %c0_33 = arith.constant 0 : index
      %c0_34 = arith.constant 0 : index
      %46 = vector.load %arg7[%c0_33, %c0_34] : memref<2x32xf32, #tpu.memory_space<vmem>>, vector<2x32xf32>
      tpu.vector_store %arg7[%c0_33, %c0_34], %45 {strides = array<i32>} : memref<2x32xf32, #tpu.memory_space<vmem>>, vector<2x32xf32>,
    } else {
    }
    %c0 = arith.constant 0 : index
    %c0_1 = arith.constant 0 : index
    %3 = vector.load %arg2[%c0, %c0_1] : memref<32x4xf32, #tpu.memory_space<vmem>>, vector<32x4xf32>
    %c0_2 = arith.constant 0 : index
    %c0_3 = arith.constant 0 : index
    %4 = vector.load %arg3[%c0_2, %c0_3] : memref<32x1xf32, #tpu.memory_space<vmem>>, vector<32x1xf32>
    %c0_4 = arith.constant 0 : index
    %c0_5 = arith.constant 0 : index
    %c0_6 = arith.constant 0 : index
    %5 = vector.load %arg1[%c0_4, %c0_5, %c0_6] : memref<2x4x128xf32, #tpu.memory_space<vmem>>, vector<1x4x128xf32>
    %6 = vector.shape_cast %5 : vector<1x4x128xf32> to vector<4x128xf32>
    %cst = arith.constant dense<0.000000e+00> : vector<32x128xf32>
    %7 = tpu.matmul %3, %6, %cst {dimension_numbers = #tpu.dot_dimension_numbers<[1], [0], [0], [1], [0, 0, 1, 1], [], []>} : vector<32x4xf32>, vector<4x128xf32>, vector<32x128xf32> -> vector<32x128xf32>
    %8 = vector.broadcast %4 : vector<32x1xf32> to vector<32x128xf32>
    %9 = arith.addf %7, %8 : vector<32x128xf32>
    %cst_7 = arith.constant 0.000000e+00 : f32
    %10 = vector.broadcast %cst_7 : f32 to vector<32x128xf32>
    %11 = arith.maximumf %9, %10 : vector<32x128xf32>
    %c0_8 = arith.constant 0 : index
    %c0_9 = arith.constant 0 : index
    %12 = vector.load %arg8[%c0_8, %c0_9] : memref<32x2xf32, #tpu.memory_space<vmem>>, vector<32x1xf32>
    %cst_10 = arith.constant dense<0.000000e+00> : vector<32xf32>
    %13 = vector.multi_reduction <add>, %11, %cst_10 [1] : vector<32x128xf32> to vector<32xf32>
    %14 = vector.shape_cast %13 : vector<32xf32> to vector<32x1xf32>
    %15 = arith.addf %12, %14 : vector<32x1xf32>
    %c0_11 = arith.constant 0 : index
    %c0_12 = arith.constant 0 : index
    %16 = vector.load %arg8[%c0_11, %c0_12] : memref<32x2xf32, #tpu.memory_space<vmem>>, vector<32x1xf32>
    tpu.vector_store %arg8[%c0_11, %c0_12], %15 {strides = array<i32>} : memref<32x2xf32, #tpu.memory_space<vmem>>, vector<32x1xf32>,
    %c1 = arith.constant 1 : index
    %c0_13 = arith.constant 0 : index
    %c0_14 = arith.constant 0 : index
    %17 = vector.load %arg1[%c1, %c0_13, %c0_14] : memref<2x4x128xf32, #tpu.memory_space<vmem>>, vector<1x4x128xf32>
    %18 = vector.shape_cast %17 : vector<1x4x128xf32> to vector<4x128xf32>
    %cst_15 = arith.constant dense<0.000000e+00> : vector<32x128xf32>
    %19 = tpu.matmul %3, %18, %cst_15 {dimension_numbers = #tpu.dot_dimension_numbers<[1], [0], [0], [1], [0, 0, 1, 1], [], []>} : vector<32x4xf32>, vector<4x128xf32>, vector<32x128xf32> -> vector<32x128xf32>
    %20 = vector.broadcast %4 : vector<32x1xf32> to vector<32x128xf32>
    %21 = arith.addf %19, %20 : vector<32x128xf32>
    %cst_16 = arith.constant 0.000000e+00 : f32
    %22 = vector.broadcast %cst_16 : f32 to vector<32x128xf32>
    %23 = arith.maximumf %21, %22 : vector<32x128xf32>
    %c0_17 = arith.constant 0 : index
    %c1_18 = arith.constant 1 : index
    %24 = vector.load %arg8[%c0_17, %c1_18] : memref<32x2xf32, #tpu.memory_space<vmem>>, vector<32x1xf32>
    %cst_19 = arith.constant dense<0.000000e+00> : vector<32xf32>
    %25 = vector.multi_reduction <add>, %23, %cst_19 [1] : vector<32x128xf32> to vector<32xf32>
    %26 = vector.shape_cast %25 : vector<32xf32> to vector<32x1xf32>
    %27 = arith.addf %24, %26 : vector<32x1xf32>
    %c0_20 = arith.constant 0 : index
    %c1_21 = arith.constant 1 : index
    %28 = vector.load %arg8[%c0_20, %c1_21] : memref<32x2xf32, #tpu.memory_space<vmem>>, vector<32x1xf32>
    tpu.vector_store %arg8[%c0_20, %c1_21], %27 {strides = array<i32>} : memref<32x2xf32, #tpu.memory_space<vmem>>, vector<32x1xf32>,
    %c1_i32 = arith.constant 1 : i32
    %29 = arith.cmpi eq, %arg0, %c1_i32 : i32
    %30 = arith.extui %29 : i1 to i32
    %c0_i32_22 = arith.constant 0 : i32
    %31 = arith.cmpi ne, %30, %c0_i32_22 : i32
    scf.if %31 {
      %c0_23 = arith.constant 0 : index
      %c0_24 = arith.constant 0 : index
      %32 = vector.load %arg8[%c0_23, %c0_24] : memref<32x2xf32, #tpu.memory_space<vmem>>, vector<32x2xf32>
      %cst_25 = arith.constant 3.906250e-03 : f32
      %33 = vector.broadcast %cst_25 : f32 to vector<32x2xf32>
      %34 = arith.mulf %32, %33 : vector<32x2xf32>
      %c0_26 = arith.constant 0 : index
      %c0_27 = arith.constant 0 : index
      %35 = vector.load %arg6[%c0_26, %c0_27] : memref<32x2xf32, #tpu.memory_space<vmem>>, vector<32x2xf32>
      tpu.vector_store %arg6[%c0_26, %c0_27], %34 {strides = array<i32>} : memref<32x2xf32, #tpu.memory_space<vmem>>, vector<32x2xf32>,
    } else {
    }
    return
  }
  func.func @transform_0(%arg0: i32) -> (i32, i32, i32) {
    %c0_i32 = arith.constant 0 : i32
    %c0_i32_0 = arith.constant 0 : i32
    %c0_i32_1 = arith.constant 0 : i32
    return %c0_i32, %c0_i32_0, %arg0 : i32, i32, i32
  }
  func.func @transform_1(%arg0: i32) -> (i32, i32) {
    %c0_i32 = arith.constant 0 : i32
    %c0_i32_0 = arith.constant 0 : i32
    %c0_i32_1 = arith.constant 0 : i32
    return %c0_i32, %c0_i32_0 : i32, i32
  }
  func.func @transform_2(%arg0: i32) -> (i32, i32) {
    %c0_i32 = arith.constant 0 : i32
    %c0_i32_0 = arith.constant 0 : i32
    %c0_i32_1 = arith.constant 0 : i32
    return %c0_i32, %c0_i32_0 : i32, i32
  }
  func.func @transform_3(%arg0: i32) -> (i32, i32) {
    %c0_i32 = arith.constant 0 : i32
    %c0_i32_0 = arith.constant 0 : i32
    %c0_i32_1 = arith.constant 0 : i32
    return %c0_i32, %c0_i32_0 : i32, i32
  }
  func.func @transform_4(%arg0: i32) -> (i32, i32) {
    %c0_i32 = arith.constant 0 : i32
    %c0_i32_0 = arith.constant 0 : i32
    %c0_i32_1 = arith.constant 0 : i32
    return %c0_i32, %c0_i32_0 : i32, i32
  }
  func.func @transform_5(%arg0: i32) -> (i32, i32) {
    %c0_i32 = arith.constant 0 : i32
    %c0_i32_0 = arith.constant 0 : i32
    %c0_i32_1 = arith.constant 0 : i32
    return %c0_i32, %c0_i32_0 : i32, i32
  }
  func.func @transform_6(%arg0: i32) -> (i32, i32) {
    %c0_i32 = arith.constant 0 : i32
    %c0_i32_0 = arith.constant 0 : i32
    %c0_i32_1 = arith.constant 0 : i32
    return %c0_i32, %c0_i32_0 : i32, i32
  }
}

</mosaic_0001>

<bundles_post_ra>
// kernel: _forward.1
= control target key start
LH: loop header
LB: loop body
LE: loop exit
PB: predicated region body
PF: predicated region fallthrough
CT: control target
= control target key end

     0   :  { %12 = vsyncpa [#allocation5], 0  ;;  %s963_s21 = smov 0   ;;  %s965_s22 = smov 0   ;;  %s1104_s0 = inlined_call_operand.vmem [shape: f32[2,4,256], index: 0, kind: input, shape index: {}]   ;;  %s1105_s1 = inlined_call_operand.vmem [shape: f32[32,4], index: 1, kind: input, shape index: {}]   ;;  %s1106_s2 = inlined_call_operand.vmem [shape: f32[32,1], index: 2, kind: input, shape index: {}]   ;;  %s1107_s3 = inlined_call_operand.vmem [shape: s32[2,8], index: 3, kind: input, shape index: {}]   ;;  %s1108_s4 = inlined_call_operand.vmem [shape: f32[32,32], index: 4, kind: input, shape index: {}]   ;;  %s1109_s5 = inlined_call_operand.vmem [shape: f32[32,2], index: 5, kind: output, shape index: {0}]   ;;  %s1110_s6 = inlined_call_operand.hbm [shape: f32[2,32], index: 6, kind: output, shape index: {1}]  }
   0x1   :  { %s967_s23 = smov 0  }
   0x2 LB: > { %s976_s24 = sadd.s32 4294967295, %s921_s23   ;;  %s978_s25 = sadd.s32 1, %s921_s23   ;;  %s921_s23 = sphi %s967_s23, %s1113_s23   ;;  %s917_s22 = sphi %s965_s22, %s1112_s22   ;;  %s913_s21 = sphi %s963_s21, %s1111_s21  }
   0x3   : > { %s22_s26 = ssub.s32 %s921_s23, %s978_s25  ;;  %s25_s27 = sadd.s32 1, %s917_s22 }
   0x4   : > { %p23_p0 = scmp.eq.s32.totalorder %s22_s26, 0  ;;  %p32_p1 = scmp.ne.s32.totalorder %s917_s22, %s913_s21 }
   0x5   : > { %p33_p2 = scmp.eq.s32.totalorder %s921_s23, 0  ;;  %p759_p4 = scmp.ge.s32.totalorder %s921_s23, 2 }
   0x6   : > { %s985_s28 = scalar_select %p23_p0, %s917_s22, %s25_s27  }
   0x7   : > { %p34_p3 = por %p33_p2, %p32_p1  ;;  %196 = sbr.rel (%p759_p4) target bundleno = 21 (0x15), region = 32 }
   0xe   : > { %199 = sbr.rel (!%p34_p3) target bundleno = 21 (0x15), region = 36  ;;  %s201_s29 = sand.u32 (%p34_p3), 1, %s917_s22  }
   0xf   : > { %s761_s30 = sshll.u32 (%p34_p3), %s921_s23, 2  ;;  %s760_s7 = sshll.u32 (%p34_p3), %s201_s29, 3 }
  0x10   : > { %s205_s10 = scalar_lea.vmem (%p34_p3), %s1104_s0, %s761_s30  ;;  %s203_s11 = scalar_lea.vmem (%p34_p3), [#allocation3], %s760_s7 }
  0x11   : > { %v221_v0 = vld [vmem:[%s205_s10] sm:$0xf] (%p34_p3)  ;;  %v223_v1 = vld [vmem:[%s205_s10 + $0x8] sm:$0xf] (%p34_p3) }
  0x12   : > { %222 = vst [vmem:[%s203_s11] sm:$0xf] (%p34_p3), %v221_v0  ;;  %224 = vst [vmem:[%s203_s11 + $0x4] sm:$0xf] (%p34_p3), %v223_v1 }
  0x15 PF: > { %p762_p5 = scmp.ge.s32.totalorder %s921_s23, 1  ;;  %p250_p6 = scmp.lt.s32.totalorder %s921_s23, 3 }
  0x17   : > { %p251_p7 = pnand %p762_p5, %p250_p6 }
  0x18   : > { %s257_s12 = sand.u32 (!%p251_p7), 1, %s913_s21   ;;  %p764_p8 = scmp.ne.s32.totalorder (!%p251_p7), %s976_s24, 0 }
  0x19   : > { %254 = sbr.rel (%p251_p7) target bundleno = 809 (0x329), region = 77  ;;  %s992_s13 = sshll.u32 (!%p251_p7), %s257_s12, 3 }
  0x1a   : > { %s259_s14 = scalar_lea.vmem (!%p251_p7), [#allocation3], %s992_s13 }
  0x20   : > { %284 = sbr.rel (%p764_p8) target bundleno = 390 (0x186), region = 85  ;;  %v291_v2 = vlaneseq (!%p764_p8)  ;;  %vm285_vm0 = vcmask (!%p764_p8), 15360   ;;  %v923_v3 = vmov (!%p764_p8), 0.0   ;;  %v290_v5 = vld [vmem:[%s1107_s3] sm:$0x3] (!%p764_p8)  ;;  %v329_v9 = vld [vmem:[%s1108_s4 + $0x8] sm:$0xff] (!%p764_p8) }
  0x21   : > { %286 = vst.msk [vmem:[#allocation2] sm:$0xff] (!%p764_p8), %vm285_vm0, %v923_v3  ;;  %287 = vst.msk [vmem:[#allocation2 + $0x8] sm:$0xff] (!%p764_p8), %vm285_vm0, %v923_v3  ;;  %v328_v8 = vld [vmem:[%s1108_s4] sm:$0xff] (!%p764_p8)  ;;  %v924_v12 = vmov (!%p764_p8), 0.0|0.0   ;;  %v330_v14 = vld [vmem:[%s1108_s4 + $0x10] sm:$0xff] (!%p764_p8)  ;;  %vm925_vm1 = vmmov (!%p764_p8), 0  }
  0x22   : > { %288 = vst.msk [vmem:[#allocation2 + $0x10] sm:$0xff] (!%p764_p8), %vm285_vm0, %v923_v3  ;;  %289 = vst.msk [vmem:[#allocation2 + $0x18] sm:$0xff] (!%p764_p8), %vm285_vm0, %v923_v3  ;;  %v294_v4 = vshrl.u32 (!%p764_p8), %v291_v2, 7  ;;  %v827_v11 = vpack.c.bf16 (!%p764_p8), %v329_v9, %v328_v8  ;;  %826 = vmatprep.subr.bf16.mxu0 (!%p764_p8), %v924_v12  ;;  %v331_v15 = vld [vmem:[%s1108_s4 + $0x18] sm:$0xff] (!%p764_p8)  ;;  %807 = vmatprep.mubr.msk.f32.mxu0 (!%p764_p8), %vm925_vm1, %v923_v3  ;;  %v292_v17 = vand.u32 (!%p764_p8), 127, %v291_v2  ;;  %vm313_vm2 = vcmask (!%p764_p8), 261120  }
  0x23   : > { %v830_v16 = vpack.c.bf16 (!%p764_p8), %v331_v15, %v330_v14  ;;  %vm334_vm5 = vcmask (!%p764_p8), 1041409   ;;  %vm409_vm6 = vcmask (!%p764_p8), 254976  }
  0x24   : > { %v295_v6 = vsub.s32 (!%p764_p8), 0, %v294_v4  ;;  %v302_v7 = vsub.s32 (!%p764_p8), 1, %v294_v4  ;;  %828 = vmatpush3.bf16.msra.mxu0 (!%p764_p8), %v827_v11 }
  0x25   : > { %829 = vmatprep.subr.bf16.mxu0 (!%p764_p8), %v924_v12 }
  0x26   : > { %v296_v10 = vrot.slane (!%p764_p8), %v290_v5, %v295_v6  ;;  %v303_v13 = vrot.slane (!%p764_p8), %v290_v5, %v302_v7 }
  0x28   : > { %298 = vbcast.lane.b32.xlu0 %v296_v10, 256  ;;  %831 = vmatpush3.bf16.msra.mxu0 %v830_v16 }
  0x2c   : > { %305 = vbcast.lane.b32.xlu0 %v303_v13, 256 }
  0x9a   : > { %v299_v18 = vpop.permute.xlu0 %298 }
  0x9b   : > { %vm307_vm3 = vcmp.eq.s32.totalorder %v299_v18, %v292_v17 }
  0x9c   : > { %v765_v19 = vsel %vm307_vm3, 1.0, %v923_v3 }
  0x9d   : > { %v314_v20 = vsel %vm313_vm2, %v765_v19, 0.0 }
  0x9e   : > { %v315_v21 = vrot.slane %v314_v20, 4  ;;  %v306_v22 = vpop.permute.xlu0 %305 }
  0x9f   : > { %vm308_vm4 = vcmp.eq.s32.totalorder %v306_v22, %v292_v17 }
  0xa0   : > { %v316_v23 = vadd.f32 %v315_v21, %v314_v20  ;;  %v766_v24 = vsel %vm308_vm4, 1.0, %v923_v3 }
  0xa1   : > { %v321_v25 = vsel %vm313_vm2, %v766_v24, 0.0 }
  0xa2   : > { %v317_v26 = vrot.slane %v316_v23, 2  ;;  %v322_v27 = vrot.slane %v321_v25, 4 }
  0xa4   : > { %v318_v28 = vadd.f32 %v317_v26, %v316_v23  ;;  %v323_v29 = vadd.f32 %v322_v27, %v321_v25 }
  0xa6   : > { %v324_v30 = vrot.slane %v323_v29, 2  ;;  %v319_v31 = vrot.slane %v318_v28, 1 }
  0xa8   : > { %v325_v32 = vadd.f32 %v324_v30, %v323_v29  ;;  %v320_v34 = vadd.f32 %v319_v31, %v318_v28 }
  0xaa   : > { %v326_v33 = vrot.slane %v325_v32, 1 }
  0xac   : > { %v327_v35 = vadd.f32 %v326_v33, %v325_v32 }
  0xae   : > { %v335_v36 = vsel %vm334_vm5, %v327_v35, %v320_v34 }
  0xaf   : > { %808 = vmatmul.mubr.msk.f32.vlgmr.msra.gmra.mrb[0].mxu0 %vm313_vm2, %v335_v36 }
 0x182   : > { %v404_v37 = vpop.f32.mrb[0].mxu0 }
 0x183   : > { %v408_v38 = vmul.f32 0.125, %v404_v37  ;;  %v809_v39 = vpop.f32.mrb[1].mxu0 }
 0x185   : > { %410 = vst.msk [vmem:[#allocation4] sm:$0x3] %vm409_vm6, %v408_v38 }
 0x186 PF: > { %v419_v40 = vld [vmem:[%s259_s14] sm:$0xf]  ;;  %vm453_vm7 = vcmask 1043456   ;;  %v773_v41 = vld [vmem:[%s259_s14 + $0x4] sm:$0xf]  ;;  %vm440_vm8 = vcmask 31744  }
 0x187   : > { %v411_v42 = vld [vmem:[%s1105_s1] sm:$0xff]  ;;  %810 = vmatprep.subr.msk.mxu0 %vm453_vm7, %v419_v40  ;;  %818 = vmatprep.subr.msk.mxu1 %vm453_vm7, %v773_v41  ;;  %v412_v43 = vld [vmem:[%s1105_s1 + $0x8] sm:$0xff]  ;;  %v413_v44 = vld [vmem:[%s1105_s1 + $0x10] sm:$0xff]  ;;  %v926_v48 = vmov 0   ;;  %vm562_vm9 = vcmask 7168   ;;  %vm677_vm10 = vcmask 15368  }
 0x188   : > { %811 = vmatpush3.msk.msra.mxu0 %vm453_vm7, %v419_v40  ;;  %812 = vmatprep.mubr.msk.f32.mxu0 %vm440_vm8, %v411_v42  ;;  %v415_v45 = vld [vmem:[%s1106_s2] sm:$0xff]  ;;  %v417_v46 = vld [vmem:[%s1106_s2 + $0x10] sm:$0xff]  ;;  %v414_v47 = vld [vmem:[%s1105_s1 + $0x18] sm:$0xff]  ;;  %p779_p9 = scmp.ne.s32.totalorder %s976_s24, 1 }
 0x189   : > { %819 = vmatpush3.msk.msra.mxu1 %vm453_vm7, %v773_v41  ;;  %820 = vmatprep.mubr.msk.f32.mxu1 %vm440_vm8, %v411_v42  ;;  %v416_v49 = vld [vmem:[%s1106_s2 + $0x8] sm:$0xff]  ;;  %v418_v50 = vld [vmem:[%s1106_s2 + $0x18] sm:$0xff]  ;;  %v546_v16 = vld [vmem:[#allocation2] sm:$0xff]  ;;  %vm694_vm11 = vcmask (!%p779_p9), 15360  }
 0x18a   : > { %813 = vmatmul.mubr.msk.f32.vlgmr.msra.gmra.mrb[0].mxu0 %vm440_vm8, %v412_v43  ;;  %821 = vmatmul.mubr.msk.f32.vlgmr.msra.gmra.mrb[0].mxu1 %vm440_vm8, %v412_v43  ;;  %v547_v15 = vld [vmem:[#allocation2 + $0x8] sm:$0xff]  ;;  %v548_v21 = vld [vmem:[#allocation2 + $0x10] sm:$0xff]  ;;  %v549_v24 = vld [vmem:[#allocation2 + $0x18] sm:$0xff] }
 0x18b   : > { %815 = vmatprep.mubr.msk.f32.mxu0 %vm440_vm8, %v413_v44  ;;  %823 = vmatprep.mubr.msk.f32.mxu1 %vm440_vm8, %v413_v44 }
 0x18c   : > { %867 = vset.pattern.permute.xlu0 %v926_v48  ;;  %868 = vset.pattern.permute.xlu1 %v926_v48 }
 0x18d   : > { %422 = vperm.xlu0 %867, %v415_v45   ;;  %432 = vperm.xlu1 %868, %v417_v46  }
 0x18e   : > { %816 = vmatmul.mubr.msk.f32.gmra.mrb[2].mxu0 %vm440_vm8, %v414_v47  ;;  %824 = vmatmul.mubr.msk.f32.gmra.mrb[2].mxu1 %vm440_vm8, %v414_v47 }
 0x191   : > { %427 = vperm.xlu0 %867, %v416_v49   ;;  %437 = vperm.xlu1 %868, %v418_v50  }
 0x20c   : > { %v423_v51 = vpop.permute.xlu0 %422  ;;  %v433_v52 = vpop.permute.xlu1 %432 }
 0x210   : > { %v428_v53 = vpop.permute.xlu0 %427  ;;  %v438_v62 = vpop.permute.xlu1 %437 }
 0x25d   : > { %v814_v54 = vpop.f32.mrb[0].mxu0  ;;  %v822_v55 = vpop.f32.mrb[0].mxu1 }
 0x25e   : > { %v529_v56 = vadd.f32 %v814_v54, %v428_v53  ;;  %v523_v57 = vpop.f32.mrb[1].mxu0  ;;  %v638_v58 = vpop.f32.mrb[1].mxu1  ;;  %v644_v10 = vadd.f32 %v822_v55, %v428_v53 }
 0x25f   : > { %v524_v59 = vadd.f32 %v523_v57, %v423_v51  ;;  %v639_v61 = vadd.f32 %v638_v58, %v423_v51 }
 0x260   : > { %v543_v60 = vmax.f32 %v529_v56, 0.0  ;;  %v658_v12 = vmax.f32 %v644_v10, 0.0 }
 0x261   : > { %v542_v63 = vmax.f32 %v524_v59, 0.0  ;;  %v817_v0 = vpop.f32.mrb[2].mxu0  ;;  %v825_v1 = vpop.f32.mrb[2].mxu1  ;;  %v657_v5 = vmax.f32 %v639_v61, 0.0 }
 0x262   : > { %v648_v2 = vpop.f32.mrb[3].mxu1  ;;  %552 = vadd.xlane.f32.xlu1 %v543_v60  ;;  %v533_v3 = vpop.f32.mrb[3].mxu0  ;;  %v539_v7 = vadd.f32 %v817_v0, %v438_v62  ;;  %v654_v13 = vadd.f32 %v825_v1, %v438_v62 }
 0x263   : > { %v534_v4 = vadd.f32 %v533_v3, %v433_v52  ;;  %550 = vadd.xlane.f32.xlu0 %v542_v63  ;;  %v649_v6 = vadd.f32 %v648_v2, %v433_v52 }
 0x264   : > { %v545_v11 = vmax.f32 %v539_v7, 0.0  ;;  %v660_v14 = vmax.f32 %v654_v13, 0.0 }
 0x265   : > { %v544_v8 = vmax.f32 %v534_v4, 0.0  ;;  %v659_v9 = vmax.f32 %v649_v6, 0.0 }
 0x266   : > { %665 = vadd.xlane.f32.xlu1 %v657_v5 }
 0x267   : > { %554 = vadd.xlane.f32.xlu0 %v544_v8 }
 0x26a   : > { %669 = vadd.xlane.f32.xlu1 %v659_v9 }
 0x26b   : > { %556 = vadd.xlane.f32.xlu0 %v545_v11 }
 0x26f   : > { %667 = vadd.xlane.f32.xlu0 %v658_v12 }
 0x273   : > { %671 = vadd.xlane.f32.xlu0 %v660_v14 }
 0x2ef   : > { %v553_v17 = vpop.xlane.xlu1 %552 }
 0x2f0   : > { %v559_v18 = vadd.f32 %v553_v17, %v547_v15  ;;  %v551_v19 = vpop.xlane.xlu0 %550 }
 0x2f1   : > { %v558_v20 = vadd.f32 %v551_v19, %v546_v16 }
 0x2f2   : > { %564 = vst.msk [vmem:[#allocation2 + $0x8] sm:$0xff] %vm562_vm9, %v559_v18 }
 0x2f3   : > { %563 = vst.msk [vmem:[#allocation2] sm:$0xff] %vm562_vm9, %v558_v20  ;;  %v666_v25 = vpop.xlane.xlu1 %665 }
 0x2f4   : > { %v555_v22 = vpop.xlane.xlu0 %554 }
 0x2f5   : > { %v560_v23 = vadd.f32 %v555_v22, %v548_v21 }
 0x2f7   : > { %565 = vst.msk [vmem:[#allocation2 + $0x10] sm:$0xff] %vm562_vm9, %v560_v23  ;;  %v670_v33 = vpop.xlane.xlu1 %669 }
 0x2f8   : > { %v557_v26 = vpop.xlane.xlu0 %556 }
 0x2f9   : > { %v561_v27 = vadd.f32 %v557_v26, %v549_v24  ;;  %v662_v30 = vld [vmem:[#allocation2 + $0x8] sm:$0xff] }
 0x2fa   : > { %v661_v28 = vld [vmem:[#allocation2] sm:$0xff] }
 0x2fb   : > { %v673_v29 = vadd.f32 %v666_v25, %v661_v28  ;;  %566 = vst.msk [vmem:[#allocation2 + $0x18] sm:$0xff] %vm562_vm9, %v561_v27 }
 0x2fc   : > { %v668_v31 = vpop.xlane.xlu0 %667 }
 0x2fd   : > { %678 = vst.msk [vmem:[#allocation2] sm:$0xff] %vm677_vm10, %v673_v29  ;;  %v674_v32 = vadd.f32 %v668_v31, %v662_v30 }
 0x2fe   : > { %v663_v34 = vld [vmem:[#allocation2 + $0x10] sm:$0xff] }
 0x2ff   : > { %v675_v35 = vadd.f32 %v670_v33, %v663_v34  ;;  %679 = vst.msk [vmem:[#allocation2 + $0x8] sm:$0xff] %vm677_vm10, %v674_v32  ;;  %685 = sbr.rel (%p779_p9) target bundleno = 784 (0x310), region = 89 }
 0x300   : > { %v672_v37 = vpop.xlane.xlu0 %671 }
 0x301   : > { %680 = vst.msk [vmem:[#allocation2 + $0x10] sm:$0xff] %vm677_vm10, %v675_v35 }
 0x302   : > { %v664_v36 = vld [vmem:[#allocation2 + $0x18] sm:$0xff] }
 0x303   : > { %v676_v38 = vadd.f32 %v672_v37, %v664_v36 }
 0x304   : > { %v686_v39 = vld [vmem:[#allocation2] sm:$0xff] (!%p779_p9) }
 0x305   : > { %681 = vst.msk [vmem:[#allocation2 + $0x18] sm:$0xff] %vm677_vm10, %v676_v38  ;;  %v690_v42 = vmul.f32 (!%p779_p9), 0.00390625, %v686_v39 }
 0x306   : > { %v687_v40 = vld [vmem:[#allocation2 + $0x8] sm:$0xff] }
 0x307   : > { %v691_v43 = vmul.f32 0.00390625, %v687_v40  ;;  %695 = vst.msk [vmem:[%s1109_s5] sm:$0xff] %vm694_vm11, %v690_v42 }
 0x308   : > { %v688_v41 = vld [vmem:[#allocation2 + $0x10] sm:$0xff] }
 0x309   : > { %v692_v44 = vmul.f32 0.00390625, %v688_v41  ;;  %696 = vst.msk [vmem:[%s1109_s5 + $0x8] sm:$0xff] %vm694_vm11, %v691_v43 }
 0x30b   : > { %697 = vst.msk [vmem:[%s1109_s5 + $0x10] sm:$0xff] %vm694_vm11, %v692_v44 }
 0x30c   : > { %v689_v45 = vld [vmem:[#allocation2 + $0x18] sm:$0xff] }
 0x30d   : > { %v693_v46 = vmul.f32 0.00390625, %v689_v45 }
 0x30f   : > { %698 = vst.msk [vmem:[%s1109_s5 + $0x18] sm:$0xff] %vm694_vm11, %v693_v46 }
 0x310 PF: > { %p836_p10 = scmp.eq.s32.totalorder %s976_s24, 1  ;;  %s927_s9 = smov [#allocation4]  }
 0x311   : > { %s709_s10 = sshll.u32 %s927_s9, 4  ;;  %s710_s10 = int_to_ptr.vmem [resolvable:$true] %s709_s10 }
 0x312   : > { %s869_s11 = scalar_lea.vmem %s710_s10, 32  ;;  %p876_p0 = scmp.lt.s32.totalorder %s710_s10, %s710_s10 }
 0x313   : > { %p870_p11 = scmp.ne.s32.totalorder %s710_s10, %s869_s11  ;;  %p877_p1 = scmp.lt.s32.totalorder %s869_s11, %s869_s11 }
 0x315   : > { %p871_p12 = pnand %p870_p11, %p836_p10  ;;  %p878_p2 = por %p877_p1, %p876_p0 }
 0x317   : > { %p872_p13 = pneg %p871_p12 }
 0x319   : > { %p879_p3 = pnand %p878_p2, %p872_p13 }
 0x31b   : > { %882 = shalt.err (!%p879_p3)
}
 0x31c   : > { %s883_s14 = scalar_lea.hbm %s1110_s6, 32 }
 0x31d   : > { %p884_p4 = scmp.ne.s32.totalorder %s1110_s6, %s883_s14  ;;  %p889_p7 = scmp.lt.u32.totalorder %s883_s14, %s1110_s6 }
 0x31f   : > { %p885_p5 = pnand %p884_p4, %p836_p10 }
 0x321   : > { %p886_p6 = pneg %p885_p5 }
 0x323   : > { %p891_p8 = pnand %p889_p7, %p886_p6 }
 0x325   : > { %894 = shalt.err (!%p891_p8)
}
 0x326   : > { %833 = dma.vmem_to_hbm [thread:$0]  (%p836_p10), %s710_s10, 32, %s1110_s6, [#allocation5]  }
 0x327   : > { %908 = dma.done.wait (%p836_p10), [#allocation5], 32  }
 0x328   : > { %910 = vsyncadd (%p836_p10), [#allocation5], 4294967264 }
 0x329 PF: > { %p15_p9 = scmp.ge.s32.totalorder %s978_s25, 4   ;;  %s1111_s21 = smov %s917_s22 }
 0x32a   : > { %s1112_s22 = smov %s985_s28  ;;  %s1113_s23 = smov %s978_s25 }
 0x32b   :  { %17 = sbr.rel (!%p15_p9) target bundleno = 2 (0x2), region = 130 }
 0x332   :  { %725 = vsyncpa [#allocation5], 1 }
 0x333   :  { %727 = vsyncpa [#allocation5 + $0x1], 1 }

</bundles_post_ra>
